<compile_context>
chip_gen: v5e
topology: v5e:2x2
jax: 0.10.0
libtpu: 0.0.40
codegen_flags: <defaults>
</compile_context>

<pallas_src>
import functools

import jax
import jax.numpy as jnp
from jax.experimental import pallas as pl
from jax.experimental.pallas import tpu as pltpu


def _round_up(x: int, m: int) -> int:
    return ((x + m - 1) // m) * m


def _pick_tile(dim: int, max_tile: int):
    """Pad `dim` to a 128-multiple and split into the fewest <=max_tile,
    128-aligned tiles. Returns (tile, padded_dim)."""
    d = _round_up(dim, 128)
    if d <= max_tile:
        return d, d
    n = -(-d // max_tile)
    tile = _round_up(-(-d // n), 128)
    return tile, tile * n


# ----------------------------- kernels --------------------------------------


def _linear_small_kernel(x_ref, wt_ref, b_ref, o_ref, *, compute_dtype):
    """Full-K / full-N block: one MXU pass, bias fused, no scratch."""
    x = x_ref[...]
    w = wt_ref[...]
    if compute_dtype is not None:
        x = x.astype(compute_dtype)
        w = w.astype(compute_dtype)
    acc = jnp.dot(x, w, preferred_element_type=jnp.float32)
    o_ref[...] = (acc + b_ref[...]).astype(o_ref.dtype)


def _linear_tiled_kernel(x_ref, wt_ref, b_ref, o_ref, acc_ref, *, compute_dtype):
    """(tm, tn) output tile accumulated over the (innermost) K grid axis.

    x_ref:  (tm, tk)   activation tile
    wt_ref: (tk, tn)   pre-transposed weight tile (in, out layout)
    b_ref:  (1, tn)    bias tile
    acc_ref:(tm, tn)   f32 VMEM accumulator, persists across K steps
    """
    k = pl.program_id(2)

    x = x_ref[...]
    w = wt_ref[...]
    if compute_dtype is not None:
        x = x.astype(compute_dtype)
        w = w.astype(compute_dtype)
    prod = jnp.dot(x, w, preferred_element_type=jnp.float32)

    @pl.when(k == 0)
    def _():
        # First K step writes product + bias directly: saves the zero-fill
        # store and the separate bias add in the epilogue.
        acc_ref[...] = prod + b_ref[...]

    @pl.when(k > 0)
    def _():
        acc_ref[...] += prod

    @pl.when(k == pl.num_programs(2) - 1)
    def _():
        o_ref[...] = acc_ref[...].astype(o_ref.dtype)


# ------------------------- parameter prep (init-time) -----------------------

_SMALL_KN_LIMIT = 1024  # full-K / full-N fast path when both dims <= this


def prepare_linear_params(weight, bias, *, max_tn=512, max_tk=1024):
    """One-time prep of nn.Linear parameters (amortized across forward calls).

    weight: (out_size, in_size)   PyTorch layout
    bias:   (out_size,)
    """
    out_size, in_size = weight.shape
    w_t = weight.T                       # (in, out): transpose ONCE at init
    b_row = bias.reshape(1, out_size)

    if in_size <= _SMALL_KN_LIMIT and out_size <= _SMALL_KN_LIMIT:
        # Fast path: full-dim K/N blocks are always legal -> no padding ever.
        return dict(mode="small", w_t=w_t, b=b_row,
                    in_size=in_size, out_size=out_size)

    tk, kp = _pick_tile(in_size, max_tk)
    tn, np_ = _pick_tile(out_size, max_tn)
    w_p = jnp.pad(w_t, ((0, kp - in_size), (0, np_ - out_size)))
    b_p = jnp.pad(b_row, ((0, 0), (0, np_ - out_size)))
    return dict(mode="tiled", w_t=w_p, b=b_p, tn=tn, tk=tk, Kp=kp, Np=np_,
                in_size=in_size, out_size=out_size)


# ------------------------------- forward ------------------------------------


def _pick_tm(batch: int) -> int:
    # Collapse the M axis for small/medium batch so the (static) weights are
    # streamed from HBM exactly once; 256 tiles (MXU friendly) beyond that.
    return _round_up(batch, 8) if batch <= 256 else 256


def _forward_small(x, params, compute_dtype):
    w_t, b = params["w_t"], params["b"]
    n = params["out_size"]
    batch, k = x.shape

    tm = _pick_tm(batch)
    bp = _round_up(batch, tm)
    x_p = x if bp == batch else jnp.pad(x, ((0, bp - batch), (0, 0)))

    kernel = functools.partial(_linear_small_kernel, compute_dtype=compute_dtype)
    out = pl.pallas_call(
        kernel,
        out_shape=jax.ShapeDtypeStruct((bp, n), x.dtype),
        grid_spec=pltpu.PrefetchScalarGridSpec(
            num_scalar_prefetch=0,
            grid=(bp // tm,),
            in_specs=[
                pl.BlockSpec((tm, k), lambda i: (i, 0)),   # x rows
                pl.BlockSpec((k, n), lambda i: (0, 0)),    # W^T (fetched once)
                pl.BlockSpec((1, n), lambda i: (0, 0)),    # bias
            ],
            out_specs=pl.BlockSpec((tm, n), lambda i: (i, 0)),
        ),
        compiler_params=pltpu.CompilerParams(
            dimension_semantics=("parallel",),
            vmem_limit_bytes=32 * 1024 * 1024,
        ),
    )(x_p, w_t, b)
    return out if bp == batch else out[:batch]


def _forward_tiled(x, params, compute_dtype):
    w_p, b_p = params["w_t"], params["b"]
    tn, tk = params["tn"], params["tk"]
    kp, np_ = params["Kp"], params["Np"]
    out_size = params["out_size"]
    batch, k = x.shape

    tm = _pick_tm(batch)
    bp = _round_up(batch, tm)
    x_p = x if (bp == batch and kp == k) else jnp.pad(
        x, ((0, bp - batch), (0, kp - k)))

    grid = (bp // tm, np_ // tn, kp // tk)
    kernel = functools.partial(_linear_tiled_kernel, compute_dtype=compute_dtype)

    flops = 2 * bp * np_ * kp
    bytes_accessed = 4 * (bp * kp * (np_ // tn) + kp * np_ * (bp // tm) + bp * np_)

    out = pl.pallas_call(
        kernel,
        out_shape=jax.ShapeDtypeStruct((bp, np_), x.dtype),
        grid_spec=pltpu.PrefetchScalarGridSpec(
            num_scalar_prefetch=0,
            grid=grid,
            in_specs=[
                pl.BlockSpec((tm, tk), lambda i, j, kk: (i, kk)),   # x
                pl.BlockSpec((tk, tn), lambda i, j, kk: (kk, j)),   # W^T
                pl.BlockSpec((1, tn), lambda i, j, kk: (0, j)),     # bias
            ],
            out_specs=pl.BlockSpec((tm, tn), lambda i, j, kk: (i, j)),
            scratch_shapes=[pltpu.VMEM((tm, tn), jnp.float32)],
        ),
        compiler_params=pltpu.CompilerParams(
            dimension_semantics=("parallel", "parallel", "arbitrary"),
            vmem_limit_bytes=32 * 1024 * 1024,
        ),
        cost_estimate=pl.CostEstimate(flops=flops, transcendentals=0,
                                      bytes_accessed=bytes_accessed),
    )(x_p, w_p, b_p)

    if bp == batch and np_ == out_size:
        return out
    return out[:batch, :out_size]


def simple_nn_forward(x, params, *, compute_dtype=None):
    """Equivalent of SimpleNN.forward(x) == nn.Linear(in, out)(x).

    x: (B, in_size) float32. `params` comes from prepare_linear_params.
    Set compute_dtype=jnp.bfloat16 to feed the MXU bf16 (changes numerics).
    """
    assert x.shape[1] == params["in_size"]
    if params["mode"] == "small":
        return _forward_small(x, params, compute_dtype)
    return _forward_tiled(x, params, compute_dtype)


# --------------------------------- test --------------------------------------

if __name__ == "__main__":
    key = jax.random.PRNGKey(0)

    # --- SimpleNN-sized problem (fast path: no padding, no scratch) ---------
    batch, input_size, output_size = 8, 32, 16
    kx, kw, kb, key = jax.random.split(key, 4)
    x = jax.random.normal(kx, (batch, input_size), dtype=jnp.float32)
    bound = 1.0 / jnp.sqrt(input_size)
    weight = jax.random.uniform(kw, (output_size, input_size),
                                minval=-bound, maxval=bound, dtype=jnp.float32)
    bias = jax.random.uniform(kb, (output_size,),
                              minval=-bound, maxval=bound, dtype=jnp.float32)

    params = prepare_linear_params(weight, bias)
    out = simple_nn_forward(x, params)
    jax.block_until_ready(out)

    ref = x @ weight.T + bias
    assert out.shape == (batch, output_size)
    assert jnp.allclose(out, ref, atol=1e-5, rtol=1e-5)

    # --- also exercise the K-tiled path once (large in_size) ----------------
    b2, in2, out2 = 64, 1152, 256
    kx2, kw2, kb2, key = jax.random.split(key, 4)
    x2 = jax.random.normal(kx2, (b2, in2), dtype=jnp.float32)
    bound2 = 1.0 / jnp.sqrt(in2)
    w2 = jax.random.uniform(kw2, (out2, in2), minval=-bound2, maxval=bound2,
                            dtype=jnp.float32)
    bz2 = jax.random.uniform(kb2, (out2,), minval=-bound2, maxval=bound2,
                             dtype=jnp.float32)
    params2 = prepare_linear_params(w2, bz2)
    o2 = simple_nn_forward(x2, params2)
    jax.block_until_ready(o2)
    ref2 = x2 @ w2.T + bz2
    assert o2.shape == (b2, out2)
    assert jnp.allclose(o2, ref2, atol=2e-3, rtol=2e-3)

    print("KERNEL_OK")
</pallas_src>

<mosaic_0001>
module attributes {stable_mosaic.version = 11 : i64} {
  func.func @_linear_small_kernel(%arg0: i32, %arg1: memref<8x32xf32, #tpu.memory_space<vmem>>, %arg2: memref<32x16xf32, #tpu.memory_space<vmem>>, %arg3: memref<1x16xf32, #tpu.memory_space<vmem>>, %arg4: memref<8x16xf32, #tpu.memory_space<vmem>>) attributes {dimension_semantics = [#tpu.dimension_semantics<parallel>], iteration_bounds = array<i64: 1>, scalar_prefetch = 0 : i64, scratch_operands = 0 : i64, tpu.core_type = #tpu.core_type<tc>, window_params = [{transform_indices = @transform_0, window_bounds = array<i64: 8, 32>}, {pipeline_mode = #tpu.pipeline_mode<synchronous>, transform_indices = @transform_1, window_bounds = array<i64: 32, 16>}, {pipeline_mode = #tpu.pipeline_mode<synchronous>, transform_indices = @transform_2, window_bounds = array<i64: 1, 16>}, {transform_indices = @transform_3, window_bounds = array<i64: 8, 16>}]} {
    %c0 = arith.constant 0 : index
    %c0_0 = arith.constant 0 : index
    %0 = vector.load %arg1[%c0, %c0_0] : memref<8x32xf32, #tpu.memory_space<vmem>>, vector<8x32xf32>
    %c0_1 = arith.constant 0 : index
    %c0_2 = arith.constant 0 : index
    %1 = vector.load %arg2[%c0_1, %c0_2] : memref<32x16xf32, #tpu.memory_space<vmem>>, vector<32x16xf32>
    %cst = arith.constant dense<0.000000e+00> : vector<8x16xf32>
    %2 = tpu.matmul %0, %1, %cst {dimension_numbers = #tpu.dot_dimension_numbers<[1], [0], [0], [1], [0, 0, 1, 1], [], []>} : vector<8x32xf32>, vector<32x16xf32>, vector<8x16xf32> -> vector<8x16xf32>
    %c0_3 = arith.constant 0 : index
    %c0_4 = arith.constant 0 : index
    %3 = vector.load %arg3[%c0_3, %c0_4] : memref<1x16xf32, #tpu.memory_space<vmem>>, vector<1x16xf32>
    %4 = vector.broadcast %3 : vector<1x16xf32> to vector<8x16xf32>
    %5 = arith.addf %2, %4 : vector<8x16xf32>
    %c0_5 = arith.constant 0 : index
    %c0_6 = arith.constant 0 : index
    %6 = vector.load %arg4[%c0_5, %c0_6] : memref<8x16xf32, #tpu.memory_space<vmem>>, vector<8x16xf32>
    tpu.vector_store %arg4[%c0_5, %c0_6], %5 {strides = array<i32>} : memref<8x16xf32, #tpu.memory_space<vmem>>, vector<8x16xf32>,
    return
  }
  func.func @transform_0(%arg0: i32) -> (i32, i32) {
    %c0_i32 = arith.constant 0 : i32
    %c0_i32_0 = arith.constant 0 : i32
    return %arg0, %c0_i32 : i32, i32
  }
  func.func @transform_1(%arg0: i32) -> (i32, i32) {
    %c0_i32 = arith.constant 0 : i32
    %c0_i32_0 = arith.constant 0 : i32
    %c0_i32_1 = arith.constant 0 : i32
    return %c0_i32, %c0_i32_0 : i32, i32
  }
  func.func @transform_2(%arg0: i32) -> (i32, i32) {
    %c0_i32 = arith.constant 0 : i32
    %c0_i32_0 = arith.constant 0 : i32
    %c0_i32_1 = arith.constant 0 : i32
    return %c0_i32, %c0_i32_0 : i32, i32
  }
  func.func @transform_3(%arg0: i32) -> (i32, i32) {
    %c0_i32 = arith.constant 0 : i32
    %c0_i32_0 = arith.constant 0 : i32
    return %arg0, %c0_i32 : i32, i32
  }
}

</mosaic_0001>

<bundles_post_ra>
// kernel: tpu_custom_call.1
= control target key start
LH: loop header
LB: loop body
LE: loop exit
PB: predicated region body
PF: predicated region fallthrough
CT: control target
= control target key end

     0   :  { %s137_s0 = inlined_call_operand.vmem [shape: f32[8,32], index: 0, kind: input, shape index: {}]   ;;  %s138_s1 = inlined_call_operand.vmem [shape: f32[32,16], index: 1, kind: input, shape index: {}]   ;;  %s139_s2 = inlined_call_operand.vmem [shape: f32[1,16], index: 2, kind: input, shape index: {}]   ;;  %s140_s3 = inlined_call_operand.hbm [shape: f32[8,16], index: 3, kind: output, shape index: {}]  }
   0x1   :  { %v19_v0 = vld [vmem:[%s138_s1 + $0x18] sm:$0xff]  ;;  %v18_v1 = vld [vmem:[%s138_s1 + $0x10] sm:$0xff]  ;;  %v17_v2 = vld [vmem:[%s138_s1 + $0x8] sm:$0xff] }
   0x2   :  { %40 = vmatpush.msra.mxu0 %v19_v0 }
   0x3   :  { %8 = vsyncpa [#allocation3], 0  ;;  %v16_v3 = vld [vmem:[%s138_s1] sm:$0xff]  ;;  %vm24_vm0 = vcmask 261120   ;;  %s95_s24 = smov [#allocation2]   ;;  %s57_s28 = sshll.u32 %s140_s3, 4  ;;  %s58_s28 = int_to_ptr.hbm [resolvable:$true] %s57_s28 }
   0x4   :  { %41 = vmatpush.msra.mxu0 %v18_v1  ;;  %v15_v4 = vld [vmem:[%s137_s0] sm:$0xff]  ;;  %s55_s25 = sshll.u32 %s95_s24, 4  ;;  %vm48_vm1 = vcmask 130048   ;;  %s56_s25 = int_to_ptr.vmem [resolvable:$true] %s55_s25 }
   0x5   :  { %v68_v5 = vld [vmem:[%s139_s2] ss:$0 sm:$0xff] }
   0x6   :  { %42 = vmatpush.msra.mxu0 %v17_v2 }
   0x8   :  { %43 = vmatpush.msra.mxu0 %v16_v3 }
   0x9   :  { %66 = vmatmul.msk.f32.vlgmr.msra.gmra.mxu0 %vm24_vm0, %v15_v4 }
  0x86   :  { %v45_v6 = vpop.f32.mrf.mxu0 }
  0x87   :  { %v46_v7 = vadd.f32 %v68_v5, %v45_v6 }
  0x89   :  { %49 = vst.msk [vmem:[#allocation2] sm:$0xff] %vm48_vm1, %v46_v7 }
  0x8a   :  { %60 = dma.vmem_to_hbm [thread:$0]  %s56_s25, 128, %s58_s28, [#allocation3]  }
  0x8b   :  { %93 = dma.done.wait [#allocation3], 128  }
  0x8c   :  { %94 = vsyncadd [#allocation3], 4294967168 }
  0x8d   :  { %65 = vsyncpa [#allocation3], 1 }

</bundles_post_ra>
